<compile_context>
chip_gen: v7x
topology: tpu7x:2x2x1
jax: 0.10.0
libtpu: 0.0.40
codegen_flags: <defaults>
</compile_context>

<pallas_src>
import jax
import jax.numpy as jnp
from jax.experimental import pallas as pl
from jax.experimental.pallas import tpu as pltpu


# ----------------------------- tiling helpers ------------------------------

_TB_CAP = 8                              # batch tile cap (sublane of mask/output)
_TS_CAP = 512                            # sequence tile cap
_HIDDEN_WINDOW_BUDGET = 8 * 1024 * 1024  # bytes for double-buffered hidden tiles


def _pick_tiles(B, S, H, itemsize, n_hidden):
    """Pick (tb, ts) that divide B/S, respect (8,128) alignment when tiled, and
    keep the double-buffered hidden-state windows inside a VMEM budget."""
    # Batch tile: multiple of 8 (mask / output sublane dim) or the full batch.
    if B <= _TB_CAP:
        tb = B
    elif B % _TB_CAP == 0:
        tb = _TB_CAP
    else:
        tb = B
    # Sequence tile: multiple of 128 (mask lane dim) or the full sequence.
    per_seq_row = 2 * n_hidden * tb * H * itemsize  # hidden-window bytes per unit of ts
    ts_cap = min(_TS_CAP, max(128, _HIDDEN_WINDOW_BUDGET // max(per_seq_row, 1)))
    if S <= ts_cap:
        ts = S
    else:
        ts = S  # fallback: no seq tiling if nothing aligned divides S
        t = (ts_cap // 128) * 128
        while t >= 128:
            if S % t == 0:
                ts = t
                break
            t -= 128
    return tb, ts


def _compiler_params():
    return pltpu.CompilerParams(
        dimension_semantics=("parallel", "arbitrary"),
        vmem_limit_bytes=32 * 1024 * 1024,
    )


# ----------------------------- Pallas kernels -----------------------------

def _cls_kernel(h_ref, o_ref):
    # h_ref is the (B, 1, H) slice containing only the [CLS] position.
    o_ref[...] = jnp.squeeze(h_ref[...], axis=1)


def _masked_avg_kernel(mask_ref, h_ref, o_ref, acc_ref, den_ref):
    sj = pl.program_id(1)

    @pl.when(sj == 0)
    def _():
        acc_ref[...] = jnp.zeros_like(acc_ref)
        den_ref[...] = jnp.zeros_like(den_ref)

    h = h_ref[...]                                    # (tb, ts, H)
    m = mask_ref[...]                                 # (tb, ts), same dtype as h
    masked = h * m[:, :, None]
    acc_ref[...] += jnp.sum(masked, axis=1, dtype=jnp.float32)            # (tb, H)
    den_ref[...] += jnp.sum(m, axis=1, keepdims=True, dtype=jnp.float32)  # (tb, 1)

    @pl.when(sj == pl.num_programs(1) - 1)
    def _():
        inv = pl.reciprocal(den_ref[...], approx=False)
        o_ref[...] = (acc_ref[...] * inv).astype(o_ref.dtype)


def _masked_avg_pair_kernel(mask_ref, h1_ref, h2_ref, o_ref, acc_ref, den_ref):
    sj = pl.program_id(1)

    @pl.when(sj == 0)
    def _():
        acc_ref[...] = jnp.zeros_like(acc_ref)
        den_ref[...] = jnp.zeros_like(den_ref)

    h = h1_ref[...] + h2_ref[...]                     # (tb, ts, H); /2 folded into denom
    m = mask_ref[...]                                 # (tb, ts)
    masked = h * m[:, :, None]
    acc_ref[...] += jnp.sum(masked, axis=1, dtype=jnp.float32)
    den_ref[...] += jnp.sum(m, axis=1, keepdims=True, dtype=jnp.float32)

    @pl.when(sj == pl.num_programs(1) - 1)
    def _():
        inv = pl.reciprocal(den_ref[...] * 2.0, approx=False)   # divide by 2*count
        o_ref[...] = (acc_ref[...] * inv).astype(o_ref.dtype)


# ------------------------------ wrappers -----------------------------------

def _cls_pool(last_hidden):
    B, S, H = last_hidden.shape
    # Slice sequence position 0 in the wrapper so only B*H elements are staged
    # into the kernel (instead of the whole (B, S, H) tensor).
    cls_slice = jax.lax.slice(last_hidden, (0, 0, 0), (B, 1, H))
    return pl.pallas_call(
        _cls_kernel,
        out_shape=jax.ShapeDtypeStruct((B, H), last_hidden.dtype),
        in_specs=[pl.BlockSpec((B, 1, H), lambda *_: (0, 0, 0))],
        out_specs=pl.BlockSpec((B, H), lambda *_: (0, 0)),
    )(cls_slice)


def _avg_pool(attention_mask, last_hidden):
    B, S, H = last_hidden.shape
    dt = last_hidden.dtype
    mask = attention_mask.astype(dt)
    tb, ts = _pick_tiles(B, S, H, jnp.dtype(dt).itemsize, n_hidden=1)
    grid = (B // tb, S // ts)
    return pl.pallas_call(
        _masked_avg_kernel,
        out_shape=jax.ShapeDtypeStruct((B, H), dt),
        grid_spec=pltpu.PrefetchScalarGridSpec(
            num_scalar_prefetch=0,
            grid=grid,
            in_specs=[
                pl.BlockSpec((tb, ts), lambda i, j: (i, j)),
                pl.BlockSpec((tb, ts, H), lambda i, j: (i, j, 0)),
            ],
            out_specs=pl.BlockSpec((tb, H), lambda i, j: (i, 0)),
            scratch_shapes=[
                pltpu.VMEM((tb, H), jnp.float32),
                pltpu.VMEM((tb, 1), jnp.float32),
            ],
        ),
        compiler_params=_compiler_params(),
    )(mask, last_hidden)


def _avg_pair_pool(attention_mask, h1, h2):
    B, S, H = h1.shape
    dt = h1.dtype
    mask = attention_mask.astype(dt)
    tb, ts = _pick_tiles(B, S, H, jnp.dtype(dt).itemsize, n_hidden=2)
    grid = (B // tb, S // ts)
    return pl.pallas_call(
        _masked_avg_pair_kernel,
        out_shape=jax.ShapeDtypeStruct((B, H), dt),
        grid_spec=pltpu.PrefetchScalarGridSpec(
            num_scalar_prefetch=0,
            grid=grid,
            in_specs=[
                pl.BlockSpec((tb, ts), lambda i, j: (i, j)),
                pl.BlockSpec((tb, ts, H), lambda i, j: (i, j, 0)),
                pl.BlockSpec((tb, ts, H), lambda i, j: (i, j, 0)),
            ],
            out_specs=pl.BlockSpec((tb, H), lambda i, j: (i, 0)),
            scratch_shapes=[
                pltpu.VMEM((tb, H), jnp.float32),
                pltpu.VMEM((tb, 1), jnp.float32),
            ],
        ),
        compiler_params=_compiler_params(),
    )(mask, h1, h2)


def pooler(pooler_type, attention_mask, outputs):
    """outputs: dict with 'last_hidden_state', 'pooler_output', 'hidden_states' (tuple)."""
    assert pooler_type in ['cls', 'cls_before_pooler', 'avg', 'avg_top2', 'avg_first_last'], (
        'unrecognized pooling type %s' % pooler_type)
    last_hidden = outputs['last_hidden_state']
    hidden_states = outputs['hidden_states']
    if pooler_type in ('cls_before_pooler', 'cls'):
        return _cls_pool(last_hidden)
    elif pooler_type == 'avg':
        return _avg_pool(attention_mask, last_hidden)
    elif pooler_type == 'avg_first_last':
        return _avg_pair_pool(attention_mask, hidden_states[0], hidden_states[-1])
    elif pooler_type == 'avg_top2':
        return _avg_pair_pool(attention_mask, hidden_states[-1], hidden_states[-2])
    else:
        raise NotImplementedError


# ------------------------------ reference ----------------------------------

def pooler_ref(pooler_type, attention_mask, outputs):
    last_hidden = outputs['last_hidden_state']
    hidden_states = outputs['hidden_states']
    if pooler_type in ('cls_before_pooler', 'cls'):
        return last_hidden[:, 0]
    m = attention_mask
    if pooler_type == 'avg':
        return (last_hidden * m[:, :, None]).sum(1) / m.sum(-1)[:, None]
    if pooler_type == 'avg_first_last':
        h = (hidden_states[0] + hidden_states[-1]) / 2.0
        return (h * m[:, :, None]).sum(1) / m.sum(-1)[:, None]
    if pooler_type == 'avg_top2':
        h = (hidden_states[-1] + hidden_states[-2]) / 2.0
        return (h * m[:, :, None]).sum(1) / m.sum(-1)[:, None]
    raise NotImplementedError


# ------------------------------- main ---------------------------------------

def _make_case(key, B, S, H, n_layers, lengths):
    keys = jax.random.split(key, n_layers)
    hidden_states = tuple(
        jax.random.normal(keys[i], (B, S, H), dtype=jnp.float32) for i in range(n_layers)
    )
    last_hidden = hidden_states[-1]
    outputs = {
        'last_hidden_state': last_hidden,
        'pooler_output': jnp.tanh(last_hidden[:, 0]),  # unused by these pooling modes
        'hidden_states': hidden_states,
    }
    attention_mask = (jnp.arange(S)[None, :] < lengths[:, None]).astype(jnp.float32)
    return attention_mask, outputs


if __name__ == "__main__":
    key = jax.random.PRNGKey(0)
    k_small, k_med = jax.random.split(key, 2)

    cases = []
    # Small case (matches the module's typical tiny-test shapes).
    B, S, H = 2, 8, 32
    cases.append(("small", B, H,
                  _make_case(k_small, B, S, H, n_layers=4, lengths=jnp.array([8, 5]))))
    # Moderate case: exercises the tiled (batch, seq) grid, multi-step sequence
    # reduction (pl.when init/finalize), and the f32 accumulators.
    B, S, H = 16, 1024, 256
    lengths = jnp.maximum(1, (jnp.arange(B) * 37 + 100) % (S + 1))
    cases.append(("medium", B, H,
                  _make_case(k_med, B, S, H, n_layers=3, lengths=lengths)))

    ok = True
    for name, Bc, Hc, (attention_mask, outputs) in cases:
        for ptype in ['cls', 'cls_before_pooler', 'avg', 'avg_first_last', 'avg_top2']:
            got = pooler(ptype, attention_mask, outputs)
            got = jax.block_until_ready(got)
            want = pooler_ref(ptype, attention_mask, outputs)
            if got.shape != (Bc, Hc):
                ok = False
                print(f"{name}/{ptype}: bad shape {got.shape}")
            elif not jnp.allclose(got, want, atol=1e-5, rtol=1e-5):
                ok = False
                print(f"{name}/{ptype}: mismatch, max abs err {jnp.max(jnp.abs(got - want))}")

    if ok:
        print("KERNEL_OK")
</pallas_src>

<mosaic_0001>
module attributes {stable_mosaic.version = 11 : i64} {
  func.func @_cls_kernel(%arg0: memref<2x1x32xf32, #tpu.memory_space<vmem>>, %arg1: memref<2x32xf32, #tpu.memory_space<vmem>>) attributes {dimension_semantics = [], scalar_prefetch = 0 : i64, scratch_operands = 0 : i64, tpu.core_type = #tpu.core_type<tc>} {
    %c0 = arith.constant 0 : index
    %c0_0 = arith.constant 0 : index
    %c0_1 = arith.constant 0 : index
    %0 = vector.load %arg0[%c0, %c0_0, %c0_1] : memref<2x1x32xf32, #tpu.memory_space<vmem>>, vector<2x1x32xf32>
    %1 = vector.shape_cast %0 : vector<2x1x32xf32> to vector<2x32xf32>
    %c0_2 = arith.constant 0 : index
    %c0_3 = arith.constant 0 : index
    %2 = vector.load %arg1[%c0_2, %c0_3] : memref<2x32xf32, #tpu.memory_space<vmem>>, vector<2x32xf32>
    tpu.vector_store %arg1[%c0_2, %c0_3], %1 {strides = array<i32>} : memref<2x32xf32, #tpu.memory_space<vmem>>, vector<2x32xf32>,
    return
  }
}

</mosaic_0001>

<bundles_post_ra>
// kernel: tpu_custom_call.1
= control target key start
LH: loop header
LB: loop body
LE: loop exit
PB: predicated region body
PF: predicated region fallthrough
CT: control target
= control target key end

     0   :  { %6 = vsyncpa [#allocation3], 0  ;;  %s152_s0 = inlined_call_operand.hbm [shape: f32[2,1,32], index: 0, kind: input, shape index: {}]   ;;  %s153_s1 = inlined_call_operand.hbm [shape: f32[2,32], index: 1, kind: output, shape index: {}]  }
   0x1   :  { %7 = vsyncpa [#allocation4], 0  ;;  %s113_s6 = smov [#allocation2]   ;;  %s65_s10 = scalar_lea.hbm %s152_s0, 32 }
   0x2   :  { %s13_s7 = sshll.u32 %s113_s6, 4  ;;  %p66_p0 = scmp.ne.s32.totalorder %s152_s0, %s65_s10  ;;  %s14_s7 = int_to_ptr.vmem [resolvable:$true] %s13_s7 }
   0x3   :  { %p69_p1 = scmp.lt.u32.totalorder %s65_s10, %s152_s0 }
   0x5   :  { %p71_p2 = pnand %p69_p1, %p66_p0 }
   0x7   :  { %74 = shalt.err (!%p71_p2)
}
   0x8   :  { %s75_s15 = scalar_lea.vmem %s14_s7, 32  ;;  %p80_p4 = scmp.lt.s32.totalorder %s14_s7, %s14_s7 }
   0x9   :  { %p76_p3 = scmp.ne.s32.totalorder %s14_s7, %s75_s15  ;;  %p81_p5 = scmp.lt.s32.totalorder %s75_s15, %s75_s15 }
   0xb   :  { %p82_p6 = por %p81_p5, %p80_p4 }
   0xd   :  { %p83_p7 = pnand %p82_p6, %p76_p3 }
   0xf   :  { %86 = shalt.err (!%p83_p7)
}
  0x10   :  { %s114_s16 = smov 16   ;;  %s115_s17 = smov 1  }
  0x11   :  { %19 = dma.hbm_to_vmem [thread:$0]  %s152_s0, 32, %s14_s7, [#allocation3], %s114_s16, %s114_s16, %s115_s17  }
  0x12   :  { %109 = dma.done.wait [#allocation3], 32  }
  0x13   :  { %110 = vsyncadd [#allocation3], 4294967264  ;;  %v31_v0 = vlaneseq  ;;  %v116_v1 = vmov 1966171168   ;;  %v23_v6 = vld [vmem:[#allocation2] sm:$0x1] }
  0x14   :  { %v29_v2 = vunpack.c.l.s4 %v116_v1  ;;  %v24_v7 = vld [vmem:[#allocation2 + $0x1] sm:$0x1]  ;;  %s117_s20 = smov [#allocation5]   ;;  %vm43_vm0 = vcmask 254976  }
  0x15   :  { %v32_v3 = vshrl.u32 %v31_v0, 7  ;;  %v27_v8 = vcombine.low %v23_v6, %v24_v7  ;;  %s51_s21 = sshll.u32 %s117_s20, 4  ;;  %s52_s21 = int_to_ptr.vmem [resolvable:$true] %s51_s21 }
  0x16   :  { %v30_v4 = vunpack.c.0.s8 %v29_v2  ;;  %s87_s22 = scalar_lea.vmem %s52_s21, 32  ;;  %p92_p9 = scmp.lt.s32.totalorder %s52_s21, %s52_s21 }
  0x17   :  { %p88_p8 = scmp.ne.s32.totalorder %s52_s21, %s87_s22  ;;  %p93_p10 = scmp.lt.s32.totalorder %s87_s22, %s87_s22 }
  0x18   :  { %v33_v5 = vsub.s32 %v30_v4, %v32_v3 }
  0x19   :  { %p94_p11 = por %p93_p10, %p92_p9 }
  0x1a   :  { %v34_v9 = vrot.slane %v27_v8, %v33_v5 }
  0x1b   :  { %p95_p12 = pnand %p94_p11, %p88_p8 }
  0x1c   :  { %v41_v10 = vrot.slane %v34_v9, %v33_v5 }
  0x1e   :  { %44 = vst.msk [vmem:[#allocation5] sm:$0x3] %vm43_vm0, %v41_v10 }
  0x1f   :  { %98 = shalt.err (!%p95_p12)
}
  0x20   :  { %s99_s24 = scalar_lea.hbm %s153_s1, 32 }
  0x21   :  { %p100_p13 = scmp.ne.s32.totalorder %s153_s1, %s99_s24  ;;  %p103_p0 = scmp.lt.u32.totalorder %s99_s24, %s153_s1 }
  0x23   :  { %p105_p1 = pnand %p103_p0, %p100_p13 }
  0x25   :  { %108 = shalt.err (!%p105_p1)
}
  0x26   :  { %54 = dma.vmem_to_hbm [thread:$0]  %s52_s21, 32, %s153_s1, [#allocation4]  }
  0x27   :  { %111 = dma.done.wait [#allocation4], 32  }
  0x28   :  { %112 = vsyncadd [#allocation4], 4294967264 }
  0x29   :  { %58 = vsyncpa [#allocation3], 1 }
  0x2a   :  { %59 = vsyncpa [#allocation4], 1 }

</bundles_post_ra>
